<compile_context>
chip_gen: v5e
topology: v5e:2x2
jax: 0.10.0
libtpu: 0.0.40
codegen_flags: <defaults>
</compile_context>

<pallas_src>
import functools

import jax
import jax.numpy as jnp
from jax import lax
from jax.experimental import pallas as pl
from jax.experimental.pallas import tpu as pltpu


# ----------------------------- Pallas kernel -------------------------------

def _fused_mha_kernel(x_ref, w_qkv_ref, w_p_ref, b_ref, mask_ref,
                      o_ref, acc_ref, *, heads_per_block, head_dim):
    # Grid: (batch, head_block).  The head-block axis is a reduction axis for
    # the output projection: each block's context is projected through its
    # matching rows of w_proj and accumulated into acc_ref, which stays
    # resident in VMEM across the head axis (output block index constant in h).
    hb = pl.program_id(1)

    @pl.when(hb == 0)
    def _init():
        # Seed the accumulator with the projection bias.
        acc_ref[...] = jnp.broadcast_to(
            b_ref[...].astype(jnp.float32), acc_ref.shape)

    HB, hd = heads_per_block, head_dim

    x = x_ref[0]                    # (T, d_in)           bf16
    w_qkv = w_qkv_ref[hb]           # (d_in, 3*HB*hd)     bf16, VMEM-resident
    w_p = w_p_ref[hb]               # (HB*hd, d_out)      bf16, VMEM-resident
    mask = mask_ref[...]            # (T, T) additive f32 (0 / -inf), resident

    # One fused QKV projection for the whole head block (full MXU lane fill).
    # The sqrt(head_dim) scale is pre-folded into the q columns of the weight.
    qkv = jnp.dot(x, w_qkv, preferred_element_type=jnp.float32)  # (T, 3*HB*hd)

    q_all = qkv[:, :HB * hd]
    k_all = qkv[:, HB * hd:2 * HB * hd]
    v_all = qkv[:, 2 * HB * hd:]

    ctxs = []
    for i in range(HB):
        sl = slice(i * hd, (i + 1) * hd)
        q = q_all[:, sl].astype(jnp.bfloat16)
        k = k_all[:, sl].astype(jnp.bfloat16)
        v = v_all[:, sl].astype(jnp.bfloat16)

        # scores = q @ k^T, contracting the last dims (no materialized k.T);
        # bf16 operands, f32 accumulation.
        scores = lax.dot_general(q, k, (((1,), (1,)), ((), ())),
                                 preferred_element_type=jnp.float32)   # (T, T)
        scores = scores + mask      # causal mask (triu, k=1); diag never masked

        # f32 softmax stats; normalization deferred to the (T, hd) context.
        m = jnp.max(scores, axis=-1, keepdims=True)
        p = jnp.exp(scores - m)
        l = jnp.sum(p, axis=-1, keepdims=True)
        # dropout p=0.0 (module default) -> identity at inference.
        # TODO(synk): stochastic dropout (p>0, training mode) not implemented.

        ctx = jnp.dot(p.astype(jnp.bfloat16), v,
                      preferred_element_type=jnp.float32)              # (T, hd)
        ctxs.append(ctx * pl.reciprocal(l, approx=True))   # deferred norm (EUP)

    ctx_block = ctxs[0] if HB == 1 else jnp.concatenate(ctxs, axis=-1)  # (T, HB*hd)

    # One (T, HB*hd) @ (HB*hd, d_out) output-projection matmul per head block,
    # accumulated into the lane-dense (T, d_out) f32 accumulator.
    acc_ref[...] += jnp.dot(ctx_block.astype(jnp.bfloat16), w_p,
                            preferred_element_type=jnp.float32)

    @pl.when(hb == pl.num_programs(1) - 1)
    def _store():
        o_ref[0] = acc_ref[...].astype(o_ref.dtype)


# ------------------------------ host wrapper -------------------------------

def mha_combined_qkv(x, w_qkv, w_proj, b_proj, num_heads):
    """Forward pass matching MultiHeadAttentionCombinedQKV (qkv_bias=False)."""
    B, T, d_in = x.shape
    d_out = w_qkv.shape[1] // 3
    assert d_out % num_heads == 0
    head_dim = d_out // num_heads

    # Head-block size: largest divisor of num_heads with HB*head_dim <= 256
    # (MXU native width on v6e/v7x) so projection / output matmuls fill the MXU.
    target = max(1, 256 // head_dim)
    heads_per_block = 1
    for cand in range(1, num_heads + 1):
        if num_heads % cand == 0 and cand <= target:
            heads_per_block = cand
    num_head_blocks = num_heads // heads_per_block
    hbd = heads_per_block * head_dim

    # --- one-time host-side weight re-layout + bf16 cast -----------------
    # w_qkv (d_in, 3*d_out) columns factor as (3, num_heads, head_dim).
    # Fold the reference's `scores / head_dim**(-0.5)` scale (== * sqrt(hd))
    # into the q columns BEFORE the bf16 cast.
    scale = float(head_dim) ** 0.5
    w = w_qkv.reshape(d_in, 3, num_head_blocks, heads_per_block, head_dim)
    w = w.at[:, 0].multiply(scale)
    # -> (nhb, d_in, 3, HB, hd) -> (nhb, d_in, 3*HB*hd): per head block the
    # columns are [q heads | k heads | v heads], each HB*hd wide.
    w_qkv_blocks = jnp.transpose(w, (2, 0, 1, 3, 4)).reshape(
        num_head_blocks, d_in, 3 * hbd).astype(jnp.bfloat16)

    # w_proj (d_out, d_out) -> per-head-block row slabs (HB*hd rows each).
    w_p_blocks = w_proj.reshape(num_head_blocks, hbd, d_out).astype(jnp.bfloat16)

    b_p = b_proj.reshape(1, d_out).astype(jnp.float32)

    # Precomputed additive causal mask; resident (constant block index), so no
    # per-(batch, head) iota/compare/select.
    causal = jnp.triu(jnp.ones((T, T), dtype=bool), k=1)
    mask = jnp.where(causal, jnp.float32(-jnp.inf), jnp.float32(0.0))

    x_b16 = x.astype(jnp.bfloat16)

    kernel = functools.partial(_fused_mha_kernel,
                               heads_per_block=heads_per_block,
                               head_dim=head_dim)

    flops = (2 * B * T * d_in * 3 * d_out              # qkv projection
             + 4 * B * num_heads * T * T * head_dim    # q@k^T and p@v
             + 2 * B * T * d_out * d_out)              # output projection
    bytes_accessed = (x_b16.size * 2 + w_qkv_blocks.size * 2
                      + w_p_blocks.size * 2 + b_p.size * 4 + mask.size * 4
                      + B * T * d_out * x.dtype.itemsize)
    cost = pl.CostEstimate(flops=flops,
                           transcendentals=B * num_heads * T * T,
                           bytes_accessed=bytes_accessed)

    return pl.pallas_call(
        kernel,
        out_shape=jax.ShapeDtypeStruct((B, T, d_out), x.dtype),
        grid=(B, num_head_blocks),
        in_specs=[
            # x: block index constant across the head axis -> DMA'd once/batch.
            pl.BlockSpec((1, T, d_in), lambda b, h: (b, 0, 0)),
            # Weights / bias / mask: full-array blocks with constant index maps
            # -> DMA'd once and VMEM-resident across the whole grid; the kernel
            # indexes the head-block axis itself.
            pl.BlockSpec((num_head_blocks, d_in, 3 * hbd), lambda b, h: (0, 0, 0)),
            pl.BlockSpec((num_head_blocks, hbd, d_out), lambda b, h: (0, 0, 0)),
            pl.BlockSpec((1, d_out), lambda b, h: (0, 0)),
            pl.BlockSpec((T, T), lambda b, h: (0, 0)),
        ],
        # Lane-dense (T, d_out) output slab, resident across the head axis.
        out_specs=pl.BlockSpec((1, T, d_out), lambda b, h: (b, 0, 0)),
        scratch_shapes=[pltpu.VMEM((T, d_out), jnp.float32)],
        compiler_params=pltpu.CompilerParams(
            dimension_semantics=("parallel", "arbitrary"),
            vmem_limit_bytes=64 * 1024 * 1024),
        cost_estimate=cost,
    )(x_b16, w_qkv_blocks, w_p_blocks, b_p, mask)


# ------------------------------ pure-JAX ref --------------------------------

def mha_ref(x, w_qkv, w_proj, b_proj, num_heads):
    B, T, _ = x.shape
    d_out = w_qkv.shape[1] // 3
    hd = d_out // num_heads
    qkv = x @ w_qkv
    qkv = qkv.reshape(B, T, 3, num_heads, hd).transpose(2, 0, 3, 1, 4)
    q, k, v = qkv[0], qkv[1], qkv[2]
    scores = jnp.einsum("bhtd,bhsd->bhts", q, k)
    mask = jnp.triu(jnp.ones((T, T), dtype=bool), k=1)
    scores = jnp.where(mask, -jnp.inf, scores)
    w = jax.nn.softmax(scores / hd ** (-0.5), axis=-1)
    ctx = jnp.einsum("bhts,bhsd->bhtd", w, v)
    ctx = ctx.transpose(0, 2, 1, 3).reshape(B, T, d_out)
    return ctx @ w_proj + b_proj


# --------------------------------- main --------------------------------------

if __name__ == "__main__":
    # Small shapes consistent with the module's forward.
    batch, seq, d_in, d_out, num_heads = 2, 8, 32, 32, 4

    key = jax.random.PRNGKey(0)
    kx, kqkv, kproj, kb = jax.random.split(key, 4)

    x = jax.random.normal(kx, (batch, seq, d_in), dtype=jnp.float32)
    # Deterministic synthetic parameters (nn.Linear-shaped, stored as (in, out)).
    w_qkv = jax.random.normal(kqkv, (d_in, 3 * d_out), dtype=jnp.float32) * 0.02
    w_proj = jax.random.normal(kproj, (d_out, d_out), dtype=jnp.float32) * 0.02
    b_proj = jax.random.normal(kb, (d_out,), dtype=jnp.float32) * 0.02

    out = mha_combined_qkv(x, w_qkv, w_proj, b_proj, num_heads)
    out = jax.block_until_ready(out)

    ref = mha_ref(x, w_qkv, w_proj, b_proj, num_heads)
    assert out.shape == (batch, seq, d_out)
    # bf16 MXU operands (f32 accumulation / f32 softmax stats) -> bf16-level tol.
    assert jnp.allclose(out, ref, rtol=2e-2, atol=2e-2), \
        "mismatch vs. pure-JAX reference"

    print("KERNEL_OK")
</pallas_src>

<mosaic_0001>
module attributes {stable_mosaic.version = 11 : i64} {
  func.func @_fused_mha_kernel(%arg0: i32, %arg1: i32, %arg2: memref<1x8x32xbf16, #tpu.memory_space<vmem>>, %arg3: memref<1x32x96xbf16, #tpu.memory_space<vmem>>, %arg4: memref<1x32x32xbf16, #tpu.memory_space<vmem>>, %arg5: memref<1x32xf32, #tpu.memory_space<vmem>>, %arg6: memref<8x8xf32, #tpu.memory_space<vmem>>, %arg7: memref<1x8x32xf32, #tpu.memory_space<vmem>>, %arg8: memref<8x32xf32, #tpu.memory_space<vmem>>) attributes {dimension_semantics = [#tpu.dimension_semantics<parallel>, #tpu.dimension_semantics<arbitrary>], iteration_bounds = array<i64: 2, 1>, scalar_prefetch = 0 : i64, scratch_operands = 1 : i64, tpu.core_type = #tpu.core_type<tc>, window_params = [{transform_indices = @transform_0, window_bounds = array<i64: 1, 8, 32>}, {pipeline_mode = #tpu.pipeline_mode<synchronous>, transform_indices = @transform_1, window_bounds = array<i64: 1, 32, 96>}, {pipeline_mode = #tpu.pipeline_mode<synchronous>, transform_indices = @transform_2, window_bounds = array<i64: 1, 32, 32>}, {pipeline_mode = #tpu.pipeline_mode<synchronous>, transform_indices = @transform_3, window_bounds = array<i64: 1, 32>}, {pipeline_mode = #tpu.pipeline_mode<synchronous>, transform_indices = @transform_4, window_bounds = array<i64: 8, 8>}, {transform_indices = @transform_5, window_bounds = array<i64: 1, 8, 32>}]} {
    %c0_i32 = arith.constant 0 : i32
    %0 = arith.cmpi eq, %arg1, %c0_i32 : i32
    %1 = arith.extui %0 : i1 to i32
    %c0_i32_0 = arith.constant 0 : i32
    %2 = arith.cmpi ne, %1, %c0_i32_0 : i32
    scf.if %2 {
      %c0_32 = arith.constant 0 : index
      %c0_33 = arith.constant 0 : index
      %105 = vector.load %arg5[%c0_32, %c0_33] : memref<1x32xf32, #tpu.memory_space<vmem>>, vector<1x32xf32>
      %106 = vector.shape_cast %105 : vector<1x32xf32> to vector<1x32xf32>
      %107 = vector.broadcast %106 : vector<1x32xf32> to vector<8x32xf32>
      %c0_34 = arith.constant 0 : index
      %c0_35 = arith.constant 0 : index
      %108 = vector.load %arg8[%c0_34, %c0_35] : memref<8x32xf32, #tpu.memory_space<vmem>>, vector<8x32xf32>
      tpu.vector_store %arg8[%c0_34, %c0_35], %107 {strides = array<i32>} : memref<8x32xf32, #tpu.memory_space<vmem>>, vector<8x32xf32>,
    } else {
    }
    %c0 = arith.constant 0 : index
    %c0_1 = arith.constant 0 : index
    %c0_2 = arith.constant 0 : index
    %3 = vector.load %arg2[%c0, %c0_1, %c0_2] : memref<1x8x32xbf16, #tpu.memory_space<vmem>>, vector<1x8x32xbf16>
    %4 = vector.shape_cast %3 : vector<1x8x32xbf16> to vector<8x32xbf16>
    %5 = arith.index_cast %arg1 : i32 to index
    %c0_3 = arith.constant 0 : index
    %c0_4 = arith.constant 0 : index
    %6 = vector.load %arg3[%5, %c0_3, %c0_4] : memref<1x32x96xbf16, #tpu.memory_space<vmem>>, vector<1x32x96xbf16>
    %7 = vector.shape_cast %6 : vector<1x32x96xbf16> to vector<32x96xbf16>
    %8 = arith.index_cast %arg1 : i32 to index
    %c0_5 = arith.constant 0 : index
    %c0_6 = arith.constant 0 : index
    %9 = vector.load %arg4[%8, %c0_5, %c0_6] : memref<1x32x32xbf16, #tpu.memory_space<vmem>>, vector<1x32x32xbf16>
    %10 = vector.shape_cast %9 : vector<1x32x32xbf16> to vector<32x32xbf16>
    %c0_7 = arith.constant 0 : index
    %c0_8 = arith.constant 0 : index
    %11 = vector.load %arg6[%c0_7, %c0_8] : memref<8x8xf32, #tpu.memory_space<vmem>>, vector<8x8xf32>
    %cst = arith.constant dense<0.000000e+00> : vector<8x96xf32>
    %12 = tpu.matmul %4, %7, %cst {dimension_numbers = #tpu.dot_dimension_numbers<[1], [0], [0], [1], [0, 0, 1, 1], [], []>} : vector<8x32xbf16>, vector<32x96xbf16>, vector<8x96xf32> -> vector<8x96xf32>
    %13 = vector.extract_strided_slice %12 {offsets = [0, 0], sizes = [8, 32], strides = [1, 1]} : vector<8x96xf32> to vector<8x32xf32>
    %14 = vector.extract_strided_slice %12 {offsets = [0, 32], sizes = [8, 32], strides = [1, 1]} : vector<8x96xf32> to vector<8x32xf32>
    %15 = vector.extract_strided_slice %12 {offsets = [0, 64], sizes = [8, 32], strides = [1, 1]} : vector<8x96xf32> to vector<8x32xf32>
    %16 = vector.extract_strided_slice %13 {offsets = [0, 0], sizes = [8, 8], strides = [1, 1]} : vector<8x32xf32> to vector<8x8xf32>
    %17 = arith.truncf %16 : vector<8x8xf32> to vector<8x8xbf16>
    %18 = vector.extract_strided_slice %14 {offsets = [0, 0], sizes = [8, 8], strides = [1, 1]} : vector<8x32xf32> to vector<8x8xf32>
    %19 = arith.truncf %18 : vector<8x8xf32> to vector<8x8xbf16>
    %20 = vector.extract_strided_slice %15 {offsets = [0, 0], sizes = [8, 8], strides = [1, 1]} : vector<8x32xf32> to vector<8x8xf32>
    %21 = arith.truncf %20 : vector<8x8xf32> to vector<8x8xbf16>
    %cst_9 = arith.constant dense<0.000000e+00> : vector<8x8xf32>
    %22 = tpu.matmul %17, %19, %cst_9 {dimension_numbers = #tpu.dot_dimension_numbers<[1], [1], [0], [0], [0, 0, 1, 0], [], []>} : vector<8x8xbf16>, vector<8x8xbf16>, vector<8x8xf32> -> vector<8x8xf32>
    %23 = arith.addf %22, %11 : vector<8x8xf32>
    %cst_10 = arith.constant dense<0xFF800000> : vector<8xf32>
    %24 = vector.multi_reduction <maximumf>, %23, %cst_10 [1] : vector<8x8xf32> to vector<8xf32>
    %25 = vector.shape_cast %24 : vector<8xf32> to vector<8x1xf32>
    %26 = vector.broadcast %25 : vector<8x1xf32> to vector<8x8xf32>
    %27 = arith.subf %23, %26 : vector<8x8xf32>
    %28 = math.exp %27 : vector<8x8xf32>
    %cst_11 = arith.constant dense<0.000000e+00> : vector<8xf32>
    %29 = vector.multi_reduction <add>, %28, %cst_11 [1] : vector<8x8xf32> to vector<8xf32>
    %30 = vector.shape_cast %29 : vector<8xf32> to vector<8x1xf32>
    %31 = arith.truncf %28 : vector<8x8xf32> to vector<8x8xbf16>
    %cst_12 = arith.constant dense<0.000000e+00> : vector<8x8xf32>
    %32 = tpu.matmul %31, %21, %cst_12 {dimension_numbers = #tpu.dot_dimension_numbers<[1], [0], [0], [1], [0, 0, 1, 1], [], []>} : vector<8x8xbf16>, vector<8x8xbf16>, vector<8x8xf32> -> vector<8x8xf32>
    %33 = tpu.reciprocal %30 {approx = true} : vector<8x1xf32> -> vector<8x1xf32>
    %34 = vector.broadcast %33 : vector<8x1xf32> to vector<8x8xf32>
    %35 = arith.mulf %32, %34 : vector<8x8xf32>
    %36 = vector.extract_strided_slice %13 {offsets = [0, 8], sizes = [8, 8], strides = [1, 1]} : vector<8x32xf32> to vector<8x8xf32>
    %37 = arith.truncf %36 : vector<8x8xf32> to vector<8x8xbf16>
    %38 = vector.extract_strided_slice %14 {offsets = [0, 8], sizes = [8, 8], strides = [1, 1]} : vector<8x32xf32> to vector<8x8xf32>
    %39 = arith.truncf %38 : vector<8x8xf32> to vector<8x8xbf16>
    %40 = vector.extract_strided_slice %15 {offsets = [0, 8], sizes = [8, 8], strides = [1, 1]} : vector<8x32xf32> to vector<8x8xf32>
    %41 = arith.truncf %40 : vector<8x8xf32> to vector<8x8xbf16>
    %cst_13 = arith.constant dense<0.000000e+00> : vector<8x8xf32>
    %42 = tpu.matmul %37, %39, %cst_13 {dimension_numbers = #tpu.dot_dimension_numbers<[1], [1], [0], [0], [0, 0, 1, 0], [], []>} : vector<8x8xbf16>, vector<8x8xbf16>, vector<8x8xf32> -> vector<8x8xf32>
    %43 = arith.addf %42, %11 : vector<8x8xf32>
    %cst_14 = arith.constant dense<0xFF800000> : vector<8xf32>
    %44 = vector.multi_reduction <maximumf>, %43, %cst_14 [1] : vector<8x8xf32> to vector<8xf32>
    %45 = vector.shape_cast %44 : vector<8xf32> to vector<8x1xf32>
    %46 = vector.broadcast %45 : vector<8x1xf32> to vector<8x8xf32>
    %47 = arith.subf %43, %46 : vector<8x8xf32>
    %48 = math.exp %47 : vector<8x8xf32>
    %cst_15 = arith.constant dense<0.000000e+00> : vector<8xf32>
    %49 = vector.multi_reduction <add>, %48, %cst_15 [1] : vector<8x8xf32> to vector<8xf32>
    %50 = vector.shape_cast %49 : vector<8xf32> to vector<8x1xf32>
    %51 = arith.truncf %48 : vector<8x8xf32> to vector<8x8xbf16>
    %cst_16 = arith.constant dense<0.000000e+00> : vector<8x8xf32>
    %52 = tpu.matmul %51, %41, %cst_16 {dimension_numbers = #tpu.dot_dimension_numbers<[1], [0], [0], [1], [0, 0, 1, 1], [], []>} : vector<8x8xbf16>, vector<8x8xbf16>, vector<8x8xf32> -> vector<8x8xf32>
    %53 = tpu.reciprocal %50 {approx = true} : vector<8x1xf32> -> vector<8x1xf32>
    %54 = vector.broadcast %53 : vector<8x1xf32> to vector<8x8xf32>
    %55 = arith.mulf %52, %54 : vector<8x8xf32>
    %56 = vector.extract_strided_slice %13 {offsets = [0, 16], sizes = [8, 8], strides = [1, 1]} : vector<8x32xf32> to vector<8x8xf32>
    %57 = arith.truncf %56 : vector<8x8xf32> to vector<8x8xbf16>
    %58 = vector.extract_strided_slice %14 {offsets = [0, 16], sizes = [8, 8], strides = [1, 1]} : vector<8x32xf32> to vector<8x8xf32>
    %59 = arith.truncf %58 : vector<8x8xf32> to vector<8x8xbf16>
    %60 = vector.extract_strided_slice %15 {offsets = [0, 16], sizes = [8, 8], strides = [1, 1]} : vector<8x32xf32> to vector<8x8xf32>
    %61 = arith.truncf %60 : vector<8x8xf32> to vector<8x8xbf16>
    %cst_17 = arith.constant dense<0.000000e+00> : vector<8x8xf32>
    %62 = tpu.matmul %57, %59, %cst_17 {dimension_numbers = #tpu.dot_dimension_numbers<[1], [1], [0], [0], [0, 0, 1, 0], [], []>} : vector<8x8xbf16>, vector<8x8xbf16>, vector<8x8xf32> -> vector<8x8xf32>
    %63 = arith.addf %62, %11 : vector<8x8xf32>
    %cst_18 = arith.constant dense<0xFF800000> : vector<8xf32>
    %64 = vector.multi_reduction <maximumf>, %63, %cst_18 [1] : vector<8x8xf32> to vector<8xf32>
    %65 = vector.shape_cast %64 : vector<8xf32> to vector<8x1xf32>
    %66 = vector.broadcast %65 : vector<8x1xf32> to vector<8x8xf32>
    %67 = arith.subf %63, %66 : vector<8x8xf32>
    %68 = math.exp %67 : vector<8x8xf32>
    %cst_19 = arith.constant dense<0.000000e+00> : vector<8xf32>
    %69 = vector.multi_reduction <add>, %68, %cst_19 [1] : vector<8x8xf32> to vector<8xf32>
    %70 = vector.shape_cast %69 : vector<8xf32> to vector<8x1xf32>
    %71 = arith.truncf %68 : vector<8x8xf32> to vector<8x8xbf16>
    %cst_20 = arith.constant dense<0.000000e+00> : vector<8x8xf32>
    %72 = tpu.matmul %71, %61, %cst_20 {dimension_numbers = #tpu.dot_dimension_numbers<[1], [0], [0], [1], [0, 0, 1, 1], [], []>} : vector<8x8xbf16>, vector<8x8xbf16>, vector<8x8xf32> -> vector<8x8xf32>
    %73 = tpu.reciprocal %70 {approx = true} : vector<8x1xf32> -> vector<8x1xf32>
    %74 = vector.broadcast %73 : vector<8x1xf32> to vector<8x8xf32>
    %75 = arith.mulf %72, %74 : vector<8x8xf32>
    %76 = vector.extract_strided_slice %13 {offsets = [0, 24], sizes = [8, 8], strides = [1, 1]} : vector<8x32xf32> to vector<8x8xf32>
    %77 = arith.truncf %76 : vector<8x8xf32> to vector<8x8xbf16>
    %78 = vector.extract_strided_slice %14 {offsets = [0, 24], sizes = [8, 8], strides = [1, 1]} : vector<8x32xf32> to vector<8x8xf32>
    %79 = arith.truncf %78 : vector<8x8xf32> to vector<8x8xbf16>
    %80 = vector.extract_strided_slice %15 {offsets = [0, 24], sizes = [8, 8], strides = [1, 1]} : vector<8x32xf32> to vector<8x8xf32>
    %81 = arith.truncf %80 : vector<8x8xf32> to vector<8x8xbf16>
    %cst_21 = arith.constant dense<0.000000e+00> : vector<8x8xf32>
    %82 = tpu.matmul %77, %79, %cst_21 {dimension_numbers = #tpu.dot_dimension_numbers<[1], [1], [0], [0], [0, 0, 1, 0], [], []>} : vector<8x8xbf16>, vector<8x8xbf16>, vector<8x8xf32> -> vector<8x8xf32>
    %83 = arith.addf %82, %11 : vector<8x8xf32>
    %cst_22 = arith.constant dense<0xFF800000> : vector<8xf32>
    %84 = vector.multi_reduction <maximumf>, %83, %cst_22 [1] : vector<8x8xf32> to vector<8xf32>
    %85 = vector.shape_cast %84 : vector<8xf32> to vector<8x1xf32>
    %86 = vector.broadcast %85 : vector<8x1xf32> to vector<8x8xf32>
    %87 = arith.subf %83, %86 : vector<8x8xf32>
    %88 = math.exp %87 : vector<8x8xf32>
    %cst_23 = arith.constant dense<0.000000e+00> : vector<8xf32>
    %89 = vector.multi_reduction <add>, %88, %cst_23 [1] : vector<8x8xf32> to vector<8xf32>
    %90 = vector.shape_cast %89 : vector<8xf32> to vector<8x1xf32>
    %91 = arith.truncf %88 : vector<8x8xf32> to vector<8x8xbf16>
    %cst_24 = arith.constant dense<0.000000e+00> : vector<8x8xf32>
    %92 = tpu.matmul %91, %81, %cst_24 {dimension_numbers = #tpu.dot_dimension_numbers<[1], [0], [0], [1], [0, 0, 1, 1], [], []>} : vector<8x8xbf16>, vector<8x8xbf16>, vector<8x8xf32> -> vector<8x8xf32>
    %93 = tpu.reciprocal %90 {approx = true} : vector<8x1xf32> -> vector<8x1xf32>
    %94 = vector.broadcast %93 : vector<8x1xf32> to vector<8x8xf32>
    %95 = arith.mulf %92, %94 : vector<8x8xf32>
    %96 = tpu.concatenate %35, %55, %75, %95 in 1 : vector<8x8xf32>, vector<8x8xf32>, vector<8x8xf32>, vector<8x8xf32> -> vector<8x32xf32>
    %c0_25 = arith.constant 0 : index
    %c0_26 = arith.constant 0 : index
    %97 = vector.load %arg8[%c0_25, %c0_26] : memref<8x32xf32, #tpu.memory_space<vmem>>, vector<8x32xf32>
    %98 = arith.truncf %96 : vector<8x32xf32> to vector<8x32xbf16>
    %cst_27 = arith.constant dense<0.000000e+00> : vector<8x32xf32>
    %99 = tpu.matmul %98, %10, %cst_27 {dimension_numbers = #tpu.dot_dimension_numbers<[1], [0], [0], [1], [0, 0, 1, 1], [], []>} : vector<8x32xbf16>, vector<32x32xbf16>, vector<8x32xf32> -> vector<8x32xf32>
    %100 = arith.addf %97, %99 : vector<8x32xf32>
    %c0_28 = arith.constant 0 : index
    %c0_29 = arith.constant 0 : index
    %101 = vector.load %arg8[%c0_28, %c0_29] : memref<8x32xf32, #tpu.memory_space<vmem>>, vector<8x32xf32>
    tpu.vector_store %arg8[%c0_28, %c0_29], %100 {strides = array<i32>} : memref<8x32xf32, #tpu.memory_space<vmem>>, vector<8x32xf32>,
    %c0_i32_30 = arith.constant 0 : i32
    %102 = arith.cmpi eq, %arg1, %c0_i32_30 : i32
    %103 = arith.extui %102 : i1 to i32
    %c0_i32_31 = arith.constant 0 : i32
    %104 = arith.cmpi ne, %103, %c0_i32_31 : i32
    scf.if %104 {
      %c0_32 = arith.constant 0 : index
      %c0_33 = arith.constant 0 : index
      %105 = vector.load %arg8[%c0_32, %c0_33] : memref<8x32xf32, #tpu.memory_space<vmem>>, vector<8x32xf32>
      %c0_34 = arith.constant 0 : index
      %c0_35 = arith.constant 0 : index
      %c0_36 = arith.constant 0 : index
      %106 = vector.load %arg7[%c0_34, %c0_35, %c0_36] : memref<1x8x32xf32, #tpu.memory_space<vmem>>, vector<1x8x32xf32>
      %107 = vector.shape_cast %106 : vector<1x8x32xf32> to vector<8x32xf32>
      %108 = vector.shape_cast %105 : vector<8x32xf32> to vector<1x8x32xf32>
      tpu.vector_store %arg7[%c0_34, %c0_35, %c0_36], %108 {strides = array<i32>} : memref<1x8x32xf32, #tpu.memory_space<vmem>>, vector<1x8x32xf32>,
    } else {
    }
    return
  }
  func.func @transform_0(%arg0: i32, %arg1: i32) -> (i32, i32, i32) {
    %c0_i32 = arith.constant 0 : i32
    %c0_i32_0 = arith.constant 0 : i32
    %c0_i32_1 = arith.constant 0 : i32
    return %arg0, %c0_i32, %c0_i32_0 : i32, i32, i32
  }
  func.func @transform_1(%arg0: i32, %arg1: i32) -> (i32, i32, i32) {
    %c0_i32 = arith.constant 0 : i32
    %c0_i32_0 = arith.constant 0 : i32
    %c0_i32_1 = arith.constant 0 : i32
    %c0_i32_2 = arith.constant 0 : i32
    return %c0_i32, %c0_i32_0, %c0_i32_1 : i32, i32, i32
  }
  func.func @transform_2(%arg0: i32, %arg1: i32) -> (i32, i32, i32) {
    %c0_i32 = arith.constant 0 : i32
    %c0_i32_0 = arith.constant 0 : i32
    %c0_i32_1 = arith.constant 0 : i32
    %c0_i32_2 = arith.constant 0 : i32
    return %c0_i32, %c0_i32_0, %c0_i32_1 : i32, i32, i32
  }
  func.func @transform_3(%arg0: i32, %arg1: i32) -> (i32, i32) {
    %c0_i32 = arith.constant 0 : i32
    %c0_i32_0 = arith.constant 0 : i32
    %c0_i32_1 = arith.constant 0 : i32
    return %c0_i32, %c0_i32_0 : i32, i32
  }
  func.func @transform_4(%arg0: i32, %arg1: i32) -> (i32, i32) {
    %c0_i32 = arith.constant 0 : i32
    %c0_i32_0 = arith.constant 0 : i32
    %c0_i32_1 = arith.constant 0 : i32
    return %c0_i32, %c0_i32_0 : i32, i32
  }
  func.func @transform_5(%arg0: i32, %arg1: i32) -> (i32, i32, i32) {
    %c0_i32 = arith.constant 0 : i32
    %c0_i32_0 = arith.constant 0 : i32
    %c0_i32_1 = arith.constant 0 : i32
    return %arg0, %c0_i32, %c0_i32_0 : i32, i32, i32
  }
}

</mosaic_0001>

<bundles_post_ra>
// kernel: tpu_custom_call.1
= control target key start
LH: loop header
LB: loop body
LE: loop exit
PB: predicated region body
PF: predicated region fallthrough
CT: control target
= control target key end

     0   :  { %10 = vsyncpa [#allocation4], 0  ;;  %s1415_s0 = inlined_call_operand.hbm [shape: bf16[2,8,32], index: 0, kind: input, shape index: {}]   ;;  %s1416_s1 = inlined_call_operand.hbm [shape: bf16[1,32,96], index: 1, kind: input, shape index: {}]   ;;  %s1417_s2 = inlined_call_operand.hbm [shape: bf16[1,32,32], index: 2, kind: input, shape index: {}]   ;;  %s1418_s3 = inlined_call_operand.vmem [shape: f32[1,32], index: 3, kind: input, shape index: {}]   ;;  %s1419_s4 = inlined_call_operand.hbm [shape: f32[8,8], index: 4, kind: input, shape index: {}]   ;;  %s1420_s5 = inlined_call_operand.hbm [shape: f32[2,8,32], index: 5, kind: output, shape index: {}]  }
   0x1   :  { %12 = vsyncpa [#allocation4 + $0x1], 0 }
   0x2   :  { %13 = vsyncpa [#allocation7], 0 }
   0x3   :  { %14 = vsyncpa [#allocation10], 0 }
   0x4   :  { %15 = vsyncpa [#allocation5], 0 }
   0x5   :  { %17 = vsyncpa [#allocation5 + $0x1], 0  ;;  %s1200_s18 = smov 0   ;;  %s1202_s19 = smov 0  }
   0x6   :  { %s1204_s20 = smov 0   ;;  %s1206_s21 = smov 0  }
   0x7   :  { %s1208_s22 = smov 0   ;;  %s1210_s23 = smov 0  }
   0x8 LB: > { %s764_s24 = sadd.s32 4294967295, %s1149_s23   ;;  %p766_p0 = scmp.ge.s32.totalorder %s1149_s23, 1  ;;  %s1149_s23 = sphi %s1210_s23, %s23_s23   ;;  %s1145_s22 = sphi %s1208_s22, %s1432_s22   ;;  %s1141_s21 = sphi %s1206_s21, %s1431_s21   ;;  %s1137_s20 = sphi %s1204_s20, %s1430_s20   ;;  %s1133_s19 = sphi %s1202_s19, %s1429_s19   ;;  %s1129_s18 = sphi %s1200_s18, %s1428_s18  }
   0x9   : > { %p1234_p1 = scmp.eq.s32.totalorder %s764_s24, 0  ;;  %p176_p2 = scmp.lt.s32.totalorder %s1149_s23, 3 }
   0xa   : > { %s187_s28 = sshll.u32 %s1416_s1, 4  ;;  %s1151_s30 = smov [#allocation6]   ;;  %s188_s28 = int_to_ptr.hbm [resolvable:$true] %s187_s28 }
   0xb   : > { %p1242_p3 = pnand %p766_p0, %p176_p2  ;;  %s189_s6 = sshll.u32 %s1151_s30, 4  ;;  %s190_s6 = int_to_ptr.vmem [resolvable:$true] %s189_s6 }
   0xc   : > { %p770_p6 = scmp.ge.s32.totalorder %s1149_s23, 2  ;;  %s201_s10 = sshll.u32 %s1417_s2, 4  ;;  %s202_s10 = int_to_ptr.hbm [resolvable:$true] %s201_s10 }
   0xd   : > { %p829_p4 = pneg %p1242_p3  ;;  %s1152_s11 = smov 64  }
   0xe   : > { %s1153_s12 = smov 4   ;;  %s1154_s13 = smov [#allocation8]  }
   0xf   : > { %p1250_p5 = pnand %p829_p4, %p1234_p1  ;;  %s203_s14 = sshll.u32 %s1154_s13, 4  ;;  %s204_s14 = int_to_ptr.vmem [resolvable:$true] %s203_s14 }
  0x10   : > { %s219_s17 = sshll.u32 %s1419_s4, 4  ;;  %s1155_s26 = smov [#allocation9]   ;;  %s220_s17 = int_to_ptr.hbm [resolvable:$true] %s219_s17 }
  0x11   : > { %832 = dma.hbm_to_vmem [thread:$0]  (!%p1250_p5), %s188_s28, 256, %s190_s6, [#allocation7], %s1152_s11, %s1152_s11, %s1153_s12  }
  0x12   : > { %835 = dma.hbm_to_vmem [thread:$0]  (!%p1250_p5), %s202_s10, 256, %s204_s14, [#allocation7], %s1152_s11, %s1152_s11, %s1153_s12  }
  0x13   : > { %s221_s27 = sshll.u32 %s1155_s26, 4  ;;  %s765_s28 = sadd.s32 4294967294, %s1149_s23   ;;  %s222_s27 = int_to_ptr.vmem [resolvable:$true] %s221_s27 }
  0x14   : > { %838 = dma.hbm_to_vmem [thread:$0]  (!%p1250_p5), %s220_s17, 128, %s222_s27, [#allocation10]  }
  0x15   : > { %s35_s30 = sadd.s32 1, %s1145_s22  ;;  %s42_s6 = sadd.s32 1, %s1137_s20 }
  0x16   : > { %p37_p7 = scmp.ge.s32.totalorder %s35_s30, 2  ;;  %p49_p8 = scmp.ne.s32.totalorder %s1137_s20, %s1133_s19 }
  0x17   : > { %p50_p9 = scmp.eq.s32.totalorder %s1149_s23, 0  ;;  %p55_p10 = scmp.ne.s32.totalorder %s1133_s19, %s1129_s18 }
  0x18   : > { %s1434_s30 = smov (%p37_p7, %s35_s30), 0  ;;  %p163_p13 = scmp.eq.s32.totalorder %s764_s24, 1 }
  0x19   : > { %p1277_p11 = por %p50_p9, %p49_p8  ;;  %p1283_p12 = por %p1234_p1, %p55_p10 }
  0x1a   : > { %s39_s9 = ssub.s32 %s1145_s22, %s1434_s30  ;;  %p169_p2 = scmp.eq.s32.totalorder %s765_s28, 1 }
  0x1b   : > { %p40_p0 = scmp.eq.s32.totalorder %s39_s9, 0  ;;  %p1291_p4 = por %p163_p13, %p49_p8 }
  0x1c   : > { %p850_p5 = scmp.lt.s32.totalorder %s1149_s23, 2  ;;  %p1299_p7 = por %p169_p2, %p55_p10 }
  0x1d   : > { %s1297_s11 = scalar_select %p40_p0, %s1137_s20, %s42_s6  }
  0x1e   : > { %s232_s13 = sand.u32 1, %s1137_s20   ;;  %s772_s15 = sshll.u32 %s1145_s22, 2 }
  0x1f   : > { %s771_s14 = sshll.u32 %s232_s13, 2  ;;  %s240_s24 = scalar_lea.hbm %s1415_s0, %s772_s15 }
  0x20   : > { %s236_s26 = scalar_lea.vmem [#allocation3], %s771_s14  ;;  %s242_s28 = sshll.u32 %s240_s24, 4  ;;  %s243_s28 = int_to_ptr.hbm [resolvable:$true] %s242_s28 }
  0x21   : > { %s244_s27 = sshll.u32 %s236_s26, 4  ;;  %p840_p8 = pnand %p850_p5, %p1277_p11  ;;  %s245_s27 = int_to_ptr.vmem [resolvable:$true] %s244_s27 }
  0x22   : > { %s233_s6 = scalar_lea.sflag [#allocation4], %s232_s13  ;;  %253 = sbr.rel (%p1242_p3) target bundleno = 985 (0x3d9), region = 40 }
  0x23   : > { %842 = dma.hbm_to_vmem [thread:$0]  (!%p840_p8), %s243_s28, 64, %s245_s27, %s233_s6  }
  0x24   : > { %s1313_s9 = sand.u32 (!%p1242_p3), 1, %s1133_s19  }
  0x25   : > { %s774_s16 = sshll.u32 (!%p1242_p3), %s1313_s9, 2  ;;  %s256_s15 = scalar_lea.sflag (!%p1242_p3), [#allocation4], %s1313_s9 }
  0x26   : > { %s259_s14 = scalar_lea.vmem (!%p1242_p3), [#allocation3], %s774_s16 }
  0x27   : > { %1112 = dma.done.wait (%p1283_p12), %s256_s15, 64  }
  0x28   : > { %1114 = vsyncadd (%p1283_p12), %s256_s15, 4294967232 }
  0x29   : > { %1116 = dma.done.wait (%p1234_p1), [#allocation7], 512  }
  0x2a   : > { %1118 = vsyncadd (%p1234_p1), [#allocation7], 4294966784 }
  0x2b   : > { %1120 = dma.done.wait (%p1234_p1), [#allocation10], 128  }
  0x2c   : > { %1122 = vsyncadd (%p1234_p1), [#allocation10], 4294967168  ;;  %v810_v0 = vld [vmem:[#allocation6 + $0x8] sm:$0xff]  ;;  %v922_v1 = vld [vmem:[%s1418_s3] ss:$0 sm:$0xff]  ;;  %vm311_vm0 = vcmask 261120  }
  0x2d   : > { %350 = vmatpush.bf16.msra.mxu0 %v810_v0  ;;  %v809_v2 = vld [vmem:[#allocation6] sm:$0xff]  ;;  %312 = vst.msk [vmem:[#allocation2] sm:$0xff] %vm311_vm0, %v922_v1  ;;  %v313_v3 = vld [vmem:[%s259_s14] sm:$0xf]  ;;  %s1156_s7 = smov 104   ;;  %s1157_s25 = smov 120  }
  0x2e   : > { %s1158_s13 = smov 96   ;;  %s1159_s17 = smov 80   ;;  %vm361_vm1 = vcmask 64512   ;;  %vm396_vm2 = vcmask 1043456   ;;  %v327_v22 = vld [vmem:[#allocation9] sm:$0xff]  ;;  %vm596_vm3 = vcmask 130048  }
  0x2f   : > { %s1160_s24 = smov 72   ;;  %s1161_s26 = smov 88   ;;  %vm598_vm4 = vcmask 195584  }
  0x30   : > { %s1162_s27 = smov 64   ;;  %s1163_s28 = smov 112  }
  0x31   : > { %351 = vmatpush.bf16.msra.mxu0 %v809_v2  ;;  %s1164_s6 = smov 56   ;;  %s1165_s16 = smov 48  }
  0x32   : > { %s1166_s15 = smov 40   ;;  %s1167_s14 = smov 8  }
  0x33   : > { %s1168_s29 = smov 16   ;;  %s1169_s8 = smov 24  }
  0x34   : > { %787 = vmatmul.msk.bf16.vlgmr.msra.gmra.mxu0 %vm311_vm0, %v313_v3 }
  0xb1   : > { %v353_v4 = vpop.f32.mrf.mxu0 }
  0xb2   : > { %v1334_v5 = vpack.c.bf16 %v353_v4, %v353_v4 }
  0xb4   : > { %527 = vrot.lane.b32.xlu2 %v1334_v5, %s1156_s7  ;;  %415 = vrot.lane.b32.xlu1 %v1334_v5, %s1157_s25  ;;  %s778_s7 = sshll.u32 %s1313_s9, 3  ;;  %s806_s25 = sshll.u32 %s1141_s21, 3 }
  0xb5   : > { %359 = vrot.lane.b32.xlu0 %v1334_v5, %s1158_s13 }
  0xb9   : > { %v355_v6 = vpop.f32.mrf.mxu0 }
  0xbc   : > { %473 = vrot.lane.b32.xlu2 %v1334_v5, %s1159_s17  ;;  %529 = vrot.lane.b32.xlu1 %v1334_v5, %s1160_s24  ;;  %s648_s24 = scalar_lea.hbm %s1420_s5, %s806_s25 }
  0xbd   : > { %417 = vrot.lane.b32.xlu0 %v1334_v5, %s1161_s26  ;;  %s301_s26 = scalar_lea.vmem [#allocation11], %s778_s7 }
  0xc4   : > { %391 = vrot.lane.b32.xlu2 %v1334_v5, %s1162_s27  ;;  %s650_s27 = sshll.u32 %s301_s26, 4  ;;  %s651_s27 = int_to_ptr.vmem [resolvable:$true] %s650_s27 }
  0xc5   : > { %471 = vrot.lane.b32.xlu0 %v1334_v5, %s1163_s28  ;;  %s652_s28 = sshll.u32 %s648_s24, 4  ;;  %s653_s28 = int_to_ptr.hbm [resolvable:$true] %s652_s28 }
  0xcc   : > { %448 = vrot.lane.b32.xlu2 %v1334_v5, %s1164_s6  ;;  %s638_s6 = scalar_lea.sflag [#allocation5], %s1313_s9 }
 0x10e   : > { %v528_v7 = vpop.permute.xlu2 %527 }
 0x116   : > { %v474_v8 = vpop.permute.xlu2 %473 }
 0x117   : > { %v479_v9 = vsel %vm361_vm1, %v474_v8, 0 }
 0x118   : > { %488 = vmatpush.bf16.xpose.msrb.mxu0 %v479_v9 }
 0x11e   : > { %v392_v10 = vpop.permute.xlu2 %391 }
 0x11f   : > { %v398_v11 = vsel %vm396_vm2, %v392_v10, 0 }
 0x120   : > { %407 = vmatpush.bf16.msra.mxu2 %v398_v11 }
 0x126   : > { %v449_v12 = vpop.permute.xlu2 %448  ;;  %v416_v13 = vpop.permute.xlu1 %415 }
 0x127   : > { %v360_v14 = vpop.permute.xlu0 %359  ;;  %v454_v15 = vsel %vm396_vm2, %v449_v12, 0 }
 0x128   : > { %v366_v16 = vsel %vm361_vm1, %v360_v14, 0  ;;  %463 = vmatpush.bf16.msrb.mxu2 %v454_v15 }
 0x129   : > { %375 = vmatpush.bf16.xpose.msra.mxu1 %v366_v16 }
 0x12e   : > { %v530_v17 = vpop.permute.xlu1 %529 }
 0x12f   : > { %v418_v18 = vpop.permute.xlu0 %417  ;;  %v535_v19 = vsel %vm361_vm1, %v530_v17, 0 }
 0x130   : > { %788 = vmatmul.msk.bf16.vlgmr.msra.gmra.mxu1 %vm361_vm1, %v1334_v5  ;;  %v423_v20 = vsel %vm361_vm1, %v418_v18, 0 }
 0x131   : > { %432 = vmatpush.bf16.xpose.msra.mxu3 %v423_v20  ;;  %v812_v20 = vld [vmem:[#allocation8 + $0x8] sm:$0xff] }
 0x132   : > { %623 = vmatpush.bf16.msra.mxu0 %v812_v20 }
 0x137   : > { %v472_v21 = vpop.permute.xlu0 %471 }
 0x138   : > { %790 = vmatmul.msk.bf16.vlgmr.msra.gmra.mxu3 %vm361_vm1, %v416_v13  ;;  %792 = vmatmul.msk.bf16.vlgmr.msrb.gmra.mxu0 %vm361_vm1, %v472_v21  ;;  %v811_v21 = vld [vmem:[#allocation8] sm:$0xff] }
 0x139   : > { %544 = vmatpush.bf16.xpose.msrb.mxu3 %v535_v19  ;;  %624 = vmatpush.bf16.msra.mxu0 %v811_v21 }
 0x148   : > { %794 = vmatmul.msk.bf16.vlgmr.msrb.gmra.mxu3 %vm361_vm1, %v528_v7 }
 0x1ad   : > { %v377_v23 = vpop.f32.mrf.mxu1 }
 0x1ae   : > { %v378_v24 = vadd.f32 %v377_v23, %v327_v22 }
 0x1b0   : > { %v381_v25 = vsel %vm361_vm1, %v378_v24, -inf }
 0x1b1   : > { %382 = vmax.xlane.f32.xlu1 %v381_v25 }
 0x1b5   : > { %v379_v26 = vpop.f32.mrf.mxu1  ;;  %v490_v27 = vpop.f32.mrf.mxu0 }
 0x1b6   : > { %v491_v28 = vadd.f32 %v490_v27, %v327_v22 }
 0x1b8   : > { %v494_v29 = vsel %vm361_vm1, %v491_v28, -inf }
 0x1b9   : > { %495 = vmax.xlane.f32.xlu1 %v494_v29 }
 0x1bb   : > { %v434_v30 = vpop.f32.mrf.mxu3 }
 0x1bc   : > { %v435_v31 = vadd.f32 %v434_v30, %v327_v22 }
 0x1bd   : > { %v492_v32 = vpop.f32.mrf.mxu0 }
 0x1be   : > { %v438_v33 = vsel %vm361_vm1, %v435_v31, -inf  ;;  %v600_v32 = vld [vmem:[#allocation2] sm:$0xff] }
 0x1bf   : > { %439 = vmax.xlane.f32.xlu0 %v438_v33 }
 0x1c3   : > { %v436_v34 = vpop.f32.mrf.mxu3 }
 0x1cb   : > { %v546_v35 = vpop.f32.mrf.mxu3 }
 0x1cc   : > { %v547_v36 = vadd.f32 %v546_v35, %v327_v22 }
 0x1ce   : > { %v550_v37 = vsel %vm361_vm1, %v547_v36, -inf }
 0x1cf   : > { %551 = vmax.xlane.f32.xlu2 %v550_v37 }
 0x1d2   : > { %504 = vrot.lane.b32.xlu1 %v1334_v5, %s1165_s16  ;;  %s1073_s16 = sshra.s32 %s653_s28, 4  ;;  %s1074_s16 = int_to_ptr.hbm [resolvable:$true] %s1073_s16 }
 0x1d3   : > { %v548_v38 = vpop.f32.mrf.mxu3  ;;  %560 = vrot.lane.b32.xlu0 %v1334_v5, %s1166_s15  ;;  %s1075_s21 = scalar_lea.hbm %s1074_s16, 8  ;;  %p1080_p10 = scmp.lt.s32.totalorder %s1074_s16, %s1420_s5 }
 0x1d4   : > { %p1076_p1 = scmp.ne.s32.totalorder %s1074_s16, %s1075_s21 }
 0x1d6   : > { %p1077_p3 = pnand %p1076_p1, %p1291_p4 }
 0x1d8   : > { %p1078_p9 = pneg %p1077_p3 }
 0x224   : > { %v383_v39 = vpop.xlane.xlu1 %382 }
 0x225   : > { %v384_v40 = vsub.f32 %v378_v24, %v383_v39 }
 0x227   : > { %v385_v41 = vmul.f32 1.442695, %v384_v40 }
 0x229   : > { %923 = vpow2.f32 %v385_v41 }
 0x22c   : > { %v496_v44 = vpop.xlane.xlu1 %495 }
 0x22d   : > { %v497_v47 = vsub.f32 %v491_v28, %v496_v44 }
 0x22f   : > { %v924_v42 = vpop.eup %923  ;;  %v498_v49 = vmul.f32 1.442695, %v497_v47 }
 0x230   : > { %v390_v43 = vpack.c.bf16 %v924_v42, %v924_v42  ;;  %v387_v1 = vsel %vm361_vm1, %v924_v42, 0.0 }
 0x232   : > { %789 = vmatmul.msk.bf16.vlgmr.msra.gmra.mxu2 %vm361_vm1, %v390_v43  ;;  %v440_v45 = vpop.xlane.xlu0 %439 }
 0x233   : > { %v441_v46 = vsub.f32 %v435_v31, %v440_v45 }
 0x235   : > { %v442_v48 = vmul.f32 1.442695, %v441_v46 }
 0x237   : > { %925 = vpow2.f32 %v442_v48 }
 0x238   : > { %927 = vpow2.f32 %v498_v49 }
 0x23d   : > { %v926_v50 = vpop.eup %925 }
 0x23e   : > { %v444_v51 = vsel %vm361_vm1, %v926_v50, 0.0  ;;  %v447_v52 = vpack.c.bf16 %v926_v50, %v926_v50  ;;  %v928_v54 = vpop.eup %927 }
 0x23f   : > { %445 = vadd.xlane.f32.xlu2 %v444_v51  ;;  %v500_v61 = vsel %vm361_vm1, %v928_v54, 0.0  ;;  %v503_v62 = vpack.c.bf16 %v928_v54, %v928_v54 }
 0x242   : > { %v552_v53 = vpop.xlane.xlu2 %551  ;;  %791 = vmatmul.msk.bf16.vlgmr.msrb.gmra.mxu2 %vm361_vm1, %v447_v52 }
 0x243   : > { %v553_v55 = vsub.f32 %v547_v36, %v552_v53 }
 0x244   : > { %v505_v56 = vpop.permute.xlu1 %504 }
 0x245   : > { %v554_v57 = vmul.f32 1.442695, %v553_v55  ;;  %v561_v58 = vpop.permute.xlu0 %560  ;;  %v510_v59 = vsel %vm396_vm2, %v505_v56, 0 }
 0x246   : > { %v566_v60 = vsel %vm396_vm2, %v561_v58, 0  ;;  %519 = vmatpush.bf16.msrb.mxu1 %v510_v59 }
 0x247   : > { %929 = vpow2.f32 %v554_v57  ;;  %575 = vmatpush.bf16.msra.mxu2 %v566_v60  ;;  %501 = vadd.xlane.f32.xlu2 %v500_v61 }
 0x249   : > { %793 = vmatmul.msk.bf16.vlgmr.msrb.gmra.mxu1 %vm361_vm1, %v503_v62 }
 0x24d   : > { %v930_v63 = vpop.eup %929 }
 0x24e   : > { %v556_v0 = vsel %vm361_vm1, %v930_v63, 0.0  ;;  %v559_v2 = vpack.c.bf16 %v930_v63, %v930_v63 }
 0x24f   : > { %557 = vadd.xlane.f32.xlu0 %v556_v0  ;;  %388 = vadd.xlane.f32.xlu2 %v387_v1 }
 0x252   : > { %795 = vmatmul.msk.bf16.vlgmr.msra.gmra.mxu2 %vm361_vm1, %v559_v2 }
 0x2b2   : > { %v446_v3 = vpop.xlane.xlu2 %445 }
 0x2b3   : > { %931 = vrcp.f32 %v446_v3 }
 0x2b5   : > { %v409_v4 = vpop.f32.mrf.mxu2 }
 0x2b9   : > { %v932_v7 = vpop.eup %931 }
 0x2ba   : > { %v502_v5 = vpop.xlane.xlu2 %501 }
 0x2bb   : > { %933 = vrcp.f32 %v502_v5 }
 0x2bd   : > { %v411_v6 = vpop.f32.mrf.mxu2 }
 0x2c1   : > { %v934_v9 = vpop.eup %933 }
 0x2c2   : > { %v558_v13 = vpop.xlane.xlu0 %557  ;;  %v389_v22 = vpop.xlane.xlu2 %388 }
 0x2c3   : > { %935 = vrcp.f32 %v558_v13 }
 0x2c4   : > { %937 = vrcp.f32 %v389_v22 }
 0x2c5   : > { %v465_v8 = vpop.f32.mrf.mxu2 }
 0x2c6   : > { %v470_v10 = vmul.f32 %v932_v7, %v465_v8  ;;  %v521_v11 = vpop.f32.mrf.mxu1 }
 0x2c7   : > { %v526_v12 = vmul.f32 %v934_v9, %v521_v11 }
 0x2c8   : > { %584 = vrot.lane.b32.xlu1 %v470_v10, %s1167_s14 }
 0x2c9   : > { %588 = vrot.lane.b32.xlu2 %v526_v12, %s1168_s29  ;;  %v936_v16 = vpop.eup %935  ;;  %s1079_s29 = scalar_lea.hbm %s1420_s5, 16 }
 0x2ca   : > { %v938_v23 = vpop.eup %937  ;;  %p1081_p11 = scmp.lt.s32.totalorder %s1079_s29, %s1075_s21 }
 0x2cb   : > { %v414_v25 = vmul.f32 %v938_v23, %v409_v4 }
 0x2cc   : > { %p1082_p12 = por %p1081_p11, %p1080_p10 }
 0x2cd   : > { %v467_v14 = vpop.f32.mrf.mxu2 }
 0x2ce   : > { %v523_v15 = vpop.f32.mrf.mxu1  ;;  %p1083_p13 = pnand %p1082_p12, %p1078_p9 }
 0x2d5   : > { %v577_v17 = vpop.f32.mrf.mxu2 }
 0x2d6   : > { %v582_v18 = vmul.f32 %v936_v16, %v577_v17 }
 0x2d8   : > { %592 = vrot.lane.b32.xlu1 %v582_v18, %s1169_s8 }
 0x2dd   : > { %v579_v19 = vpop.f32.mrf.mxu2 }
 0x323   : > { %v589_v27 = vpop.permute.xlu2 %588 }
 0x33a   : > { %v585_v24 = vpop.permute.xlu1 %584 }
 0x33b   : > { %v595_v26 = vsel %vm361_vm1, %v414_v25, %v585_v24 }
 0x33c   : > { %v597_v28 = vsel %vm596_vm3, %v595_v26, %v589_v27 }
 0x34a   : > { %v593_v29 = vpop.permute.xlu1 %592 }
 0x34b   : > { %v599_v30 = vsel %vm598_vm4, %v597_v28, %v593_v29 }
 0x34c   : > { %v601_v31 = vpack.c.bf16 %v599_v30, %v599_v30 }
 0x34e   : > { %804 = vmatmul.msk.bf16.vlgmr.msra.gmra.mxu0 %vm311_vm0, %v601_v31 }
 0x3cb   : > { %v626_v33 = vpop.f32.mrf.mxu0 }
 0x3cc   : > { %v630_v34 = vadd.f32 %v626_v33, %v600_v32 }
 0x3ce   : > { %631 = vst.msk [vmem:[#allocation2] sm:$0xff] %vm311_vm0, %v630_v34 }
 0x3d3   : > { %v628_v35 = vpop.f32.mrf.mxu0 }
 0x3d5   : > { %v635_v36 = vld [vmem:[#allocation2] sm:$0xff] }
 0x3d6   : > { %636 = vst.msk [vmem:[%s301_s26] sm:$0xff] %vm311_vm0, %v635_v36 }
 0x3d7   : > { %1086 = shalt.err (!%p1083_p13)
}
 0x3d8   : > { %827 = dma.vmem_to_hbm [thread:$0]  (%p1291_p4), %s651_s27, 128, %s653_s28, %s638_s6  }
 0x3d9 PF: > { %s664_s9 = sand.u32 1, %s1129_s18   ;;  %p844_p0 = pnand %p770_p6, %p1299_p7 }
 0x3da   : > { %s665_s25 = scalar_lea.sflag [#allocation5], %s664_s9 }
 0x3db   : > { %p845_p2 = pneg %p844_p0 }
 0x3dd   : > { %1124 = dma.done.wait (%p845_p2), %s665_s25, 128  }
 0x3de   : > { %1126 = vsyncadd (%p845_p2), %s665_s25, 4294967168  ;;  %s23_s23 = sadd.s32 1, %s1149_s23   ;;  %s1428_s18 = smov %s1133_s19 }
 0x3df   : > { %p20_p5 = scmp.ge.s32.totalorder %s23_s23, 4   ;;  %s1429_s19 = smov %s1137_s20 }
 0x3e0   : > { %s1430_s20 = smov %s1297_s11  ;;  %s1431_s21 = smov %s1145_s22 }
 0x3e1   : > { %s1432_s22 = smov %s1434_s30  ;;  %22 = sbr.rel (!%p20_p5) target bundleno = 8 (0x8), region = 107 }
 0x3e6   :  { %671 = vsyncpa [#allocation4], 1 }
 0x3e7   :  { %673 = vsyncpa [#allocation4 + $0x1], 1 }
 0x3e8   :  { %674 = vsyncpa [#allocation7], 1 }
 0x3e9   :  { %675 = vsyncpa [#allocation10], 1 }
 0x3ea   :  { %676 = vsyncpa [#allocation5], 1 }
 0x3eb   :  { %678 = vsyncpa [#allocation5 + $0x1], 1 }

</bundles_post_ra>
